<compile_context>
chip_gen: v7x
topology: tpu7x:2x2x1
jax: 0.10.0
libtpu: 0.0.40
codegen_flags: <defaults>
</compile_context>

<pallas_src>
import numpy as np
import jax
import jax.numpy as jnp
from jax.experimental import pallas as pl
from jax.experimental.pallas import tpu as pltpu

_LANE = 128
_SUB = 8
_MAX_TILE_ROWS = 1024   # sweepable: 512-2048; 1024x128 f32 = 512 KiB per input block
_NUM_CORES = 2          # v7x has 2 TCs; on v5e/v6e the parallel axis just runs sequentially


def _make_kernel(tile_rows, rows, steps_per_core, needs_mask):
    """Build the kernel with static tiling parameters closed over."""

    def kernel(x_ref, t_ref, out_ref):
        c = pl.program_id(0)   # core / parallel axis
        i = pl.program_id(1)   # reduction axis (sequential per core)

        # Zero this core's resident (8,128) accumulator block at its first step.
        @pl.when(i == 0)
        def _():
            out_ref[...] = jnp.zeros_like(out_ref)

        x = x_ref[...].astype(jnp.float32)
        t = t_ref[...].astype(jnp.float32)

        if needs_mask:
            # Mask rows past the end of the slab (ragged last block and/or
            # fully-empty blocks on the second core).  x=1, t=1 contributes
            # exactly 0 to the clamped BCE below.
            b = c * steps_per_core + i
            rid = b * tile_rows + jax.lax.broadcasted_iota(
                jnp.int32, (tile_rows, _LANE), 0)
            valid = rid < rows
            x = jnp.where(valid, x, 1.0)
            t = jnp.where(valid, t, 1.0)

        # Match torch.nn.BCELoss: log terms clamped to >= -100.
        log_x = jnp.maximum(jnp.log(x), -100.0)
        log_1mx = jnp.maximum(jnp.log1p(-x), -100.0)
        bce = -(t * log_x + (1.0 - t) * log_1mx)

        # (tile_rows,128) -> (tile_rows/8, 8, 128) -> sum over leading axis.
        # Pure vreg-wise VPU adds (no cross-lane reduce), accumulated into the
        # VMEM-resident output block owned by this core.
        out_ref[...] += bce.reshape(tile_rows // _SUB, _SUB, _LANE).sum(axis=0)

    return kernel


def vae_loss(recon_x, target, mu, logvar):
    """Pallas implementation of VAE_loss.forward((recon_x, mu, logvar), target)."""
    assert recon_x.shape == target.shape
    total = int(np.prod(recon_x.shape))

    # Slab rows, forced to a multiple of 8 (sublane alignment).
    rows = int(pl.cdiv(total, _SUB * _LANE)) * _SUB
    pad = rows * _LANE - total

    def to_slab(a):
        flat = a.reshape(-1)
        if pad:
            # Rare unaligned case only: pad with 1.0 (exactly 0 BCE contribution
            # because of the -100 clamp).  Aligned inputs take the free-reshape path.
            flat = jnp.pad(flat, (0, pad), constant_values=1.0)
        return flat.reshape(rows, _LANE)

    # Keep original dtype (e.g. bf16 upstream would halve HBM traffic); the
    # kernel upcasts to f32 internally.
    x_slab = to_slab(recon_x)
    t_slab = to_slab(target)

    tile_rows = min(_MAX_TILE_ROWS, rows)           # multiple of 8 by construction
    blocks_needed = int(pl.cdiv(rows, tile_rows))
    steps_per_core = int(pl.cdiv(blocks_needed, _NUM_CORES))
    needs_mask = (_NUM_CORES * steps_per_core * tile_rows) != rows

    def in_map(c, i):
        b = c * steps_per_core + i
        # Clamp so empty trailing blocks never index past the array; their
        # (re-read) data is fully masked off in the kernel.
        return (jnp.minimum(b, blocks_needed - 1), 0)

    kernel = _make_kernel(tile_rows, rows, steps_per_core, needs_mask)

    partials = pl.pallas_call(
        kernel,
        out_shape=jax.ShapeDtypeStruct((_NUM_CORES * _SUB, _LANE), jnp.float32),
        grid_spec=pltpu.PrefetchScalarGridSpec(
            num_scalar_prefetch=0,
            grid=(_NUM_CORES, steps_per_core),
            in_specs=[
                pl.BlockSpec((tile_rows, _LANE), in_map),
                pl.BlockSpec((tile_rows, _LANE), in_map),
            ],
            out_specs=pl.BlockSpec((_SUB, _LANE), lambda c, i: (c, 0)),
        ),
        compiler_params=pltpu.CompilerParams(
            dimension_semantics=("parallel", "arbitrary")),
    )(x_slab, t_slab)

    # Final tiny reductions in plain XLA.
    bce = jnp.sum(partials)

    mu_f = mu.astype(jnp.float32)
    lv_f = logvar.astype(jnp.float32)
    kld = -0.5 * jnp.sum(1.0 + lv_f - mu_f * mu_f - jnp.exp(lv_f))

    return bce + kld


def _reference(recon_x, target, mu, logvar):
    x = recon_x.astype(jnp.float32)
    t = target.astype(jnp.float32)
    bce = -jnp.sum(
        t * jnp.maximum(jnp.log(x), -100.0)
        + (1.0 - t) * jnp.maximum(jnp.log1p(-x), -100.0)
    )
    kld = -0.5 * jnp.sum(1.0 + logvar - mu * mu - jnp.exp(logvar))
    return bce + kld


if __name__ == "__main__":
    key = jax.random.PRNGKey(0)
    k1, k2, k3, k4 = jax.random.split(key, 4)

    B, C, H, W = 2, 4, 16, 16   # recon_x / target (NCHW)
    Z = 32                      # latent dim for mu / logvar

    recon_x = jax.nn.sigmoid(jax.random.normal(k1, (B, C, H, W), jnp.float32))
    target = jax.random.uniform(k2, (B, C, H, W), jnp.float32)
    mu = 0.5 * jax.random.normal(k3, (B, Z), jnp.float32)
    logvar = 0.5 * jax.random.normal(k4, (B, Z), jnp.float32)

    loss = vae_loss(recon_x, target, mu, logvar)
    jax.block_until_ready(loss)

    ref = _reference(recon_x, target, mu, logvar)
    assert np.allclose(np.asarray(loss), np.asarray(ref), rtol=1e-4, atol=1e-3), (
        float(loss),
        float(ref),
    )

    print("KERNEL_OK")
</pallas_src>

<mosaic_0001>
module attributes {stable_mosaic.version = 11 : i64} {
  func.func @kernel(%arg0: i32, %arg1: i32, %arg2: memref<16x128xf32, #tpu.memory_space<vmem>>, %arg3: memref<16x128xf32, #tpu.memory_space<vmem>>, %arg4: memref<8x128xf32, #tpu.memory_space<vmem>>) attributes {dimension_semantics = [#tpu.dimension_semantics<parallel>, #tpu.dimension_semantics<arbitrary>], iteration_bounds = array<i64: 2, 1>, scalar_prefetch = 0 : i64, scratch_operands = 0 : i64, tpu.core_type = #tpu.core_type<tc>, window_params = [{transform_indices = @transform_0, window_bounds = array<i64: 16, 128>}, {transform_indices = @transform_1, window_bounds = array<i64: 16, 128>}, {transform_indices = @transform_2, window_bounds = array<i64: 8, 128>}]} {
    %c0_i32 = arith.constant 0 : i32
    %0 = arith.cmpi eq, %arg1, %c0_i32 : i32
    %1 = arith.extui %0 : i1 to i32
    %c0_i32_0 = arith.constant 0 : i32
    %2 = arith.cmpi ne, %1, %c0_i32_0 : i32
    scf.if %2 {
      %cst_16 = arith.constant 0.000000e+00 : f32
      %37 = vector.broadcast %cst_16 : f32 to vector<8x128xf32>
      %c0_17 = arith.constant 0 : index
      %c0_18 = arith.constant 0 : index
      %38 = vector.load %arg4[%c0_17, %c0_18] : memref<8x128xf32, #tpu.memory_space<vmem>>, vector<8x128xf32>
      tpu.vector_store %arg4[%c0_17, %c0_18], %37 {strides = array<i32>} : memref<8x128xf32, #tpu.memory_space<vmem>>, vector<8x128xf32>,
    } else {
    }
    %c0 = arith.constant 0 : index
    %c0_1 = arith.constant 0 : index
    %3 = vector.load %arg2[%c0, %c0_1] : memref<16x128xf32, #tpu.memory_space<vmem>>, vector<16x128xf32>
    %c0_2 = arith.constant 0 : index
    %c0_3 = arith.constant 0 : index
    %4 = vector.load %arg3[%c0_2, %c0_3] : memref<16x128xf32, #tpu.memory_space<vmem>>, vector<16x128xf32>
    %c1_i32 = arith.constant 1 : i32
    %5 = arith.muli %arg0, %c1_i32 : i32
    %6 = arith.addi %5, %arg1 : i32
    %c16_i32 = arith.constant 16 : i32
    %7 = arith.muli %6, %c16_i32 : i32
    %8 = tpu.iota {dimensions = array<i32: 0>} : vector<16x128xi32>
    %9 = vector.broadcast %7 : i32 to vector<16x128xi32>
    %10 = arith.addi %9, %8 : vector<16x128xi32>
    %c16_i32_4 = arith.constant 16 : i32
    %11 = vector.broadcast %c16_i32_4 : i32 to vector<16x128xi32>
    %12 = arith.cmpi slt, %10, %11 : vector<16x128xi32>
    %cst = arith.constant 1.000000e+00 : f32
    %13 = vector.broadcast %cst : f32 to vector<16x128xf32>
    %14 = arith.select %12, %3, %13 : vector<16x128xi1>, vector<16x128xf32>
    %cst_5 = arith.constant 1.000000e+00 : f32
    %15 = vector.broadcast %cst_5 : f32 to vector<16x128xf32>
    %16 = arith.select %12, %4, %15 : vector<16x128xi1>, vector<16x128xf32>
    %17 = math.log %14 : vector<16x128xf32>
    %cst_6 = arith.constant -1.000000e+02 : f32
    %18 = vector.broadcast %cst_6 : f32 to vector<16x128xf32>
    %19 = arith.maximumf %17, %18 : vector<16x128xf32>
    %cst_7 = arith.constant 0.000000e+00 : f32
    %20 = vector.broadcast %cst_7 : f32 to vector<16x128xf32>
    %21 = arith.subf %20, %14 : vector<16x128xf32>
    %22 = math.log1p %21 : vector<16x128xf32>
    %cst_8 = arith.constant -1.000000e+02 : f32
    %23 = vector.broadcast %cst_8 : f32 to vector<16x128xf32>
    %24 = arith.maximumf %22, %23 : vector<16x128xf32>
    %25 = arith.mulf %16, %19 : vector<16x128xf32>
    %cst_9 = arith.constant 1.000000e+00 : f32
    %26 = vector.broadcast %cst_9 : f32 to vector<16x128xf32>
    %27 = arith.subf %26, %16 : vector<16x128xf32>
    %28 = arith.mulf %27, %24 : vector<16x128xf32>
    %29 = arith.addf %25, %28 : vector<16x128xf32>
    %cst_10 = arith.constant 0.000000e+00 : f32
    %30 = vector.broadcast %cst_10 : f32 to vector<16x128xf32>
    %31 = arith.subf %30, %29 : vector<16x128xf32>
    %c0_11 = arith.constant 0 : index
    %c0_12 = arith.constant 0 : index
    %32 = vector.load %arg4[%c0_11, %c0_12] : memref<8x128xf32, #tpu.memory_space<vmem>>, vector<8x128xf32>
    %33 = vector.shape_cast %31 : vector<16x128xf32> to vector<2x8x128xf32>
    %cst_13 = arith.constant dense<0.000000e+00> : vector<8x128xf32>
    %34 = vector.multi_reduction <add>, %33, %cst_13 [0] : vector<2x8x128xf32> to vector<8x128xf32>
    %35 = arith.addf %32, %34 : vector<8x128xf32>
    %c0_14 = arith.constant 0 : index
    %c0_15 = arith.constant 0 : index
    %36 = vector.load %arg4[%c0_14, %c0_15] : memref<8x128xf32, #tpu.memory_space<vmem>>, vector<8x128xf32>
    tpu.vector_store %arg4[%c0_14, %c0_15], %35 {strides = array<i32>} : memref<8x128xf32, #tpu.memory_space<vmem>>, vector<8x128xf32>,
    return
  }
  func.func @transform_0(%arg0: i32, %arg1: i32) -> (i32, i32) {
    %c1_i32 = arith.constant 1 : i32
    %0 = arith.muli %arg0, %c1_i32 : i32
    %1 = arith.addi %0, %arg1 : i32
    %c0_i32 = arith.constant 0 : i32
    %2 = arith.minsi %1, %c0_i32 : i32
    %c0_i32_0 = arith.constant 0 : i32
    %c0_i32_1 = arith.constant 0 : i32
    return %2, %c0_i32_0 : i32, i32
  }
  func.func @transform_1(%arg0: i32, %arg1: i32) -> (i32, i32) {
    %c1_i32 = arith.constant 1 : i32
    %0 = arith.muli %arg0, %c1_i32 : i32
    %1 = arith.addi %0, %arg1 : i32
    %c0_i32 = arith.constant 0 : i32
    %2 = arith.minsi %1, %c0_i32 : i32
    %c0_i32_0 = arith.constant 0 : i32
    %c0_i32_1 = arith.constant 0 : i32
    return %2, %c0_i32_0 : i32, i32
  }
  func.func @transform_2(%arg0: i32, %arg1: i32) -> (i32, i32) {
    %c0_i32 = arith.constant 0 : i32
    %c0_i32_0 = arith.constant 0 : i32
    return %arg0, %c0_i32 : i32, i32
  }
}

</mosaic_0001>

<bundles_post_ra>
// kernel: tpu_custom_call.1
= control target key start
LH: loop header
LB: loop body
LE: loop exit
PB: predicated region body
PF: predicated region fallthrough
CT: control target
= control target key end

     0   :  { %7 = vsyncpa [#allocation3], 0  ;;  %s944_s0 = inlined_call_operand.hbm [shape: f32[16,128], index: 0, kind: input, shape index: {}]   ;;  %s945_s1 = inlined_call_operand.hbm [shape: f32[16,128], index: 1, kind: input, shape index: {}]   ;;  %s946_s2 = inlined_call_operand.hbm [shape: f32[16,128], index: 2, kind: output, shape index: {}]  }
   0x1   :  { %9 = vsyncpa [#allocation3 + $0x1], 0 }
   0x2   :  { %10 = vsyncpa [#allocation6], 0 }
   0x3   :  { %12 = vsyncpa [#allocation6 + $0x1], 0 }
   0x4   :  { %13 = vsyncpa [#allocation4], 0 }
   0x5   :  { %15 = vsyncpa [#allocation4 + $0x1], 0  ;;  %s732_s9 = smov 0   ;;  %s734_s10 = smov 0  }
   0x6   :  { %s736_s11 = smov 0   ;;  %s738_s12 = smov 0  }
   0x7   :  { %s740_s13 = smov 0   ;;  %s742_s14 = smov 0  }
   0x8   :  { %s744_s15 = smov 0   ;;  %s746_s16 = smov 0  }
   0x9 LB: > { %s420_s17 = sadd.s32 4294967295, %s710_s16   ;;  %s421_s18 = sadd.s32 4294967294, %s710_s16   ;;  %s710_s16 = sphi %s746_s16, %s21_s16   ;;  %s706_s15 = sphi %s744_s15, %s965_s15   ;;  %s702_s14 = sphi %s742_s14, %s964_s14   ;;  %s698_s13 = sphi %s740_s13, %s934_s13   ;;  %s694_s12 = sphi %s738_s12, %s963_s12   ;;  %s690_s11 = sphi %s736_s11, %s962_s11   ;;  %s686_s10 = sphi %s734_s10, %s961_s10   ;;  %s682_s9 = sphi %s732_s9, %s960_s9  }
   0xa   : > { %s33_s19 = sadd.s32 1, %s706_s15  ;;  %p679_p1 = scmp.ne.s32.totalorder %s698_s13, 0 }
   0xb   : > { %p35_p0 = scmp.ge.s32.totalorder %s33_s19, 2  ;;  %p54_p2 = scmp.eq.s32.totalorder %s710_s16, 0 }
   0xc   : > { %p59_p3 = scmp.ne.s32.totalorder %s698_s13, %s694_s12  ;;  %p60_p5 = scmp.eq.s32.totalorder %s420_s17, 0 }
   0xd   : > { %s967_s19 = smov (%p35_p0, %s33_s19), 0  ;;  %p778_p4 = por %p679_p1, %p54_p2 }
   0xe   : > { %p782_p6 = por %p60_p5, %p59_p3  ;;  %s101_s22 = ssub.s32 %s706_s15, %s967_s19 }
   0xf   : > { %p102_p7 = scmp.eq.s32.totalorder %s101_s22, 0  ;;  %s104_s23 = sadd.s32 1, %s690_s11 }
  0x10   : > { %s950_s21 = scalar_select %p782_p6, 1, 0 }
  0x11   : > { %s790_s24 = scalar_select %p102_p7, %s690_s11, %s104_s23  }
  0x12   : > { %p114_p8 = scmp.ne.s32.totalorder %s690_s11, %s686_s10  ;;  %p115_p9 = scmp.eq.s32.totalorder %s420_s17, 1 }
  0x13   : > { %p120_p10 = scmp.ne.s32.totalorder %s686_s10, %s682_s9  ;;  %p121_p11 = scmp.eq.s32.totalorder %s421_s18, 1 }
  0x14   : > { %p796_p12 = por %p115_p9, %p114_p8  ;;  %p458_p1 = scmp.lt.s32.totalorder %s710_s16, 2 }
  0x15   : > { %p801_p0 = por %p121_p11, %p120_p10  ;;  %s712_s27 = smov [#allocation2]  }
  0x16   : > { %s951_s25 = scalar_select %p796_p12, 1, 0 }
  0x17   : > { %s952_s26 = scalar_select %p801_p0, 1, 0 }
  0x18   : > { %s155_s28 = sshll.u32 %s712_s27, 4  ;;  %p808_p2 = pnand %p458_p1, %p778_p4  ;;  %s156_s28 = int_to_ptr.vmem [resolvable:$true] %s155_s28 }
  0x19   : > { %s543_s4 = scalar_lea.hbm %s944_s0, 256 }
  0x1a   : > { %p544_p3 = scmp.ne.s32.totalorder %s944_s0, %s543_s4  ;;  %p545_p5 = pneg %p808_p2 }
  0x1b   : > { %p550_p8 = scmp.lt.u32.totalorder %s543_s4, %s543_s4  ;;  %p552_p9 = scmp.lt.u32.totalorder %s543_s4, %s944_s0 }
  0x1c   : > { %p546_p7 = pnand %p545_p5, %p544_p3 }
  0x1d   : > { %p553_p10 = por %p552_p9, %p550_p8 }
  0x1e   : > { %p547_p4 = pneg %p546_p7 }
  0x20   : > { %p554_p11 = pnand %p553_p10, %p547_p4 }
  0x22   : > { %557 = shalt.err (!%p554_p11)
}
  0x23   : > { %s558_s12 = scalar_lea.vmem %s156_s28, 256  ;;  %s565_s17 = scalar_lea.vmem %s156_s28, 512 }
  0x24   : > { %p559_p1 = scmp.ne.s32.totalorder %s156_s28, %s558_s12  ;;  %p566_p12 = scmp.lt.s32.totalorder %s156_s28, %s156_s28 }
  0x25   : > { %p567_p6 = scmp.lt.s32.totalorder %s565_s17, %s558_s12 }
  0x26   : > { %p561_p13 = pnand %p559_p1, %p545_p5 }
  0x27   : > { %p568_p3 = por %p567_p6, %p566_p12 }
  0x28   : > { %p562_p0 = pneg %p561_p13 }
  0x2a   : > { %p569_p7 = pnand %p568_p3, %p562_p0 }
  0x2c   : > { %572 = shalt.err (!%p569_p7)
}
  0x2d   : > { %s713_s18 = smov 128   ;;  %s714_s20 = smov 8  }
  0x2e   : > { %450 = dma.hbm_to_vmem [thread:$0]  (!%p808_p2), %s944_s0, 256, %s156_s28, [#allocation3], %s713_s18, %s713_s18, %s714_s20  }
  0x2f   : > { %p430_p13 = scmp.ge.s32.totalorder %s710_s16, 1  ;;  %p187_p4 = scmp.lt.s32.totalorder %s710_s16, 3 }
  0x30   : > { %s715_s30 = smov [#allocation5]   ;;  %s573_s6 = scalar_lea.hbm %s945_s1, 256 }
  0x31   : > { %p839_p8 = pnand %p430_p13, %p187_p4  ;;  %s179_s3 = sshll.u32 %s715_s30, 4  ;;  %s180_s3 = int_to_ptr.vmem [resolvable:$true] %s179_s3 }
  0x32   : > { %p574_p6 = scmp.ne.s32.totalorder %s945_s1, %s573_s6  ;;  %p580_p9 = scmp.lt.u32.totalorder %s573_s6, %s573_s6 }
  0x33   : > { %s954_s27 = scalar_select %p839_p8, 1, 0 }
  0x34   : > { %p576_p12 = pnand %p574_p6, %p545_p5  ;;  %p582_p10 = scmp.lt.u32.totalorder %s573_s6, %s945_s1 }
  0x36   : > { %p577_p0 = pneg %p576_p12  ;;  %p583_p11 = por %p582_p10, %p580_p9 }
  0x38   : > { %p584_p1 = pnand %p583_p11, %p577_p0 }
  0x3a   : > { %587 = shalt.err (!%p584_p1)
}
  0x3b   : > { %s588_s17 = scalar_lea.vmem %s180_s3, 256  ;;  %s595_s22 = scalar_lea.vmem %s180_s3, 512 }
  0x3c   : > { %p589_p3 = scmp.ne.s32.totalorder %s180_s3, %s588_s17  ;;  %p596_p4 = scmp.lt.s32.totalorder %s180_s3, %s180_s3 }
  0x3d   : > { %p597_p8 = scmp.lt.s32.totalorder %s595_s22, %s588_s17 }
  0x3e   : > { %p591_p7 = pnand %p589_p3, %p545_p5 }
  0x3f   : > { %p598_p6 = por %p597_p8, %p596_p4 }
  0x40   : > { %p592_p13 = pneg %p591_p7 }
  0x42   : > { %p599_p12 = pnand %p598_p6, %p592_p13 }
  0x44   : > { %602 = shalt.err (!%p599_p12)
}
  0x45   : > { %453 = dma.hbm_to_vmem [thread:$0]  (!%p808_p2), %s945_s1, 256, %s180_s3, [#allocation6], %s713_s18, %s713_s18, %s714_s20  }
  0x46   : > { %p955_p0 = scmp.ne.s32.totalorder %s954_s27, 0 }
  0x47   : > { %s193_s4 = sand.u32 (!%p955_p0), 1, %s698_s13   ;;  %p956_p5 = scmp.ne.s32.totalorder (!%p955_p0), %s950_s21, 0 }
  0x48   : > { %191 = sbr.rel (%p955_p0) target bundleno = 134 (0x86), region = 28  ;;  %s431_s5 = sshll.u32 (!%p955_p0), %s193_s4, 4 }
  0x49   : > { %s194_s6 = scalar_lea.sflag (!%p955_p0), [#allocation3], %s193_s4  ;;  %s197_s7 = scalar_lea.vmem (!%p955_p0), [#allocation2], %s431_s5 }
  0x4f   : > { %668 = dma.done.wait (%p956_p5), %s194_s6, 256  }
  0x50   : > { %670 = vsyncadd (%p956_p5), %s194_s6, 4294967040  ;;  %s203_s29 = scalar_lea.sflag [#allocation6], %s193_s4  ;;  %s873_s8 = scalar_lea.vmem [#allocation5], %s431_s5 }
  0x51   : > { %672 = dma.done.wait (%p956_p5), %s203_s29, 256  }
  0x52   : > { %674 = vsyncadd (%p956_p5), %s203_s29, 4294967040  ;;  %s434_s18 = sshll.u32 %s702_s14, 4  ;;  %v251_v0 = vlaneseq  ;;  %v245_v6 = vld [vmem:[%s197_s7] sm:$0xff]  ;;  %v246_v7 = vld [vmem:[%s197_s7 + $0x8] sm:$0xff]  ;;  %s229_s21 = sand.u32 1, %s686_s10  }
  0x53   : > { %v254_v1 = vstv %s434_s18  ;;  %v247_v18 = vld [vmem:[%s873_s8] sm:$0xff]  ;;  %v248_v22 = vld [vmem:[%s873_s8 + $0x8] sm:$0xff]  ;;  %s433_s20 = sshll.u32 %s229_s21, 3  ;;  %s436_s27 = sshll.u32 %s702_s14, 7 }
  0x54   : > { %v252_v2 = vshrl.u32 %v251_v0, 7  ;;  %s231_s3 = scalar_lea.vmem [#allocation7], %s433_s20  ;;  %s891_s22 = scalar_lea.hbm %s946_s2, %s436_s27 }
  0x55   : > { %s319_s28 = sshll.u32 %s231_s3, 4  ;;  %s306_s23 = scalar_lea.sflag [#allocation4], %s229_s21  ;;  %s893_s28 = int_to_ptr.vmem [resolvable:$true] %s319_s28 }
  0x56   : > { %v253_v3 = vadd.s32 8, %v252_v2  ;;  %v255_v4 = vadd.s32 %v254_v1, %v252_v2  ;;  %s603_s30 = scalar_lea.vmem %s893_s28, 128  ;;  %p957_p8 = scmp.ne.s32.totalorder %s951_s25, 0 }
  0x57   : > { %p604_p2 = scmp.ne.s32.totalorder %s893_s28, %s603_s30  ;;  %s716_s14 = smov [#allocation7]  }
  0x58   : > { %v256_v5 = vadd.s32 %v254_v1, %v253_v3  ;;  %vm257_vm0 = vcmp.lt.s32.totalorder %v255_v4, 16  ;;  %s607_s4 = sshll.u32 %s716_s14, 4  ;;  %s608_s4 = int_to_ptr.vmem [resolvable:$false] %s607_s4 }
  0x59   : > { %v259_v8 = vsel %vm257_vm0, %v245_v6, 1.0  ;;  %v261_v26 = vsel %vm257_vm0, %v247_v18, 1.0  ;;  %p605_p9 = pnand %p604_p2, %p957_p8  ;;  %s609_s5 = scalar_lea.vmem %s608_s4, 256 }
  0x5a   : > { %vm258_vm1 = vcmp.lt.s32.totalorder %v256_v5, 16  ;;  %535 = vlog2.f32 %v259_v8  ;;  %v269_v10 = vsub.f32 0.0, %v259_v8  ;;  %v293_v36 = vsub.f32 1.0, %v261_v26  ;;  %p610_p11 = scmp.lt.s32.totalorder %s893_s28, %s608_s4  ;;  %p611_p1 = scmp.lt.s32.totalorder %s609_s5, %s603_s30 }
  0x5b   : > { %v260_v9 = vsel %vm258_vm1, %v246_v7, 1.0  ;;  %v262_v29 = vsel %vm258_vm1, %v248_v22, 1.0  ;;  %p606_p10 = pneg %p605_p9 }
  0x5c   : > { %537 = vlog2.f32 %v260_v9  ;;  %v270_v11 = vsub.f32 0.0, %v260_v9  ;;  %v271_v12 = vadd.f32 1.0, %v269_v10  ;;  %v274_v14 = vmul.f32 -0.5, %v269_v10  ;;  %p612_p3 = por %p611_p1, %p610_p11 }
  0x5d   : > { %v277_v19 = vand.u32 2147483647, %v269_v10  ;;  %v294_v38 = vsub.f32 1.0, %v262_v29 }
  0x5e   : > { %v280_v13 = vadd.f32 1.0, %v270_v11  ;;  %539 = vlog2.f32 %v271_v12  ;;  %v283_v15 = vmul.f32 -0.5, %v270_v11  ;;  %v275_v16 = vadd.f32 1.0, %v274_v14  ;;  %p613_p7 = pnand %p612_p3, %p606_p10 }
  0x5f   : > { %v286_v24 = vand.u32 2147483647, %v270_v11  ;;  %vm278_vm2 = vcmp.lt.f32.partialorder %v277_v19, 0.0004427343 }
  0x60   : > { %541 = vlog2.f32 %v280_v13  ;;  %v284_v20 = vadd.f32 1.0, %v283_v15  ;;  %v276_v27 = vmul.f32 %v275_v16, %v269_v10 }
  0x61   : > { %vm287_vm3 = vcmp.lt.f32.partialorder %v286_v24, 0.0004427343 }
  0x62   : > { %v285_v31 = vmul.f32 %v284_v20, %v270_v11 }
  0x64   : > { %v536_v17 = vpop.eup %535 }
  0x65   : > { %v264_v23 = vmul.f32 0.6931472, %v536_v17 }
  0x66   : > { %v538_v21 = vpop.eup %537 }
  0x67   : > { %v266_v25 = vmul.f32 0.6931472, %v538_v21  ;;  %v267_v30 = vmax.f32 %v264_v23, -100.0 }
  0x68   : > { %v540_v28 = vpop.eup %539 }
  0x69   : > { %v268_v33 = vmax.f32 %v266_v25, -100.0  ;;  %v273_v34 = vmul.f32 0.6931472, %v540_v28  ;;  %v291_v41 = vmul.f32 %v267_v30, %v261_v26 }
  0x6a   : > { %v542_v32 = vpop.eup %541 }
  0x6b   : > { %v282_v35 = vmul.f32 0.6931472, %v542_v32  ;;  %v279_v37 = vsel %vm278_vm2, %v276_v27, %v273_v34  ;;  %v292_v43 = vmul.f32 %v268_v33, %v262_v29 }
  0x6c   : > { %v289_v40 = vmax.f32 %v279_v37, -100.0 }
  0x6d   : > { %v288_v39 = vsel %vm287_vm3, %v285_v31, %v282_v35 }
  0x6e   : > { %v290_v42 = vmax.f32 %v288_v39, -100.0  ;;  %v295_v44 = vmul.f32 %v293_v36, %v289_v40 }
  0x70   : > { %v296_v45 = vmul.f32 %v294_v38, %v290_v42  ;;  %v297_v46 = vadd.f32 %v295_v44, %v291_v41 }
  0x72   : > { %v298_v47 = vadd.f32 %v296_v45, %v292_v43  ;;  %v299_v48 = vsub.f32 0.0, %v297_v46 }
  0x74   : > { %v300_v49 = vsub.f32 0.0, %v298_v47 }
  0x76   : > { %v302_v50 = vadd.f32 %v300_v49, %v299_v48 }
  0x78   : > { %304 = vst [vmem:[%s231_s3] sm:$0xff] %v302_v50 }
  0x79   : > { %616 = shalt.err (!%p613_p7)
}
  0x7a   : > { %s617_s6 = scalar_lea.hbm %s891_s22, 128  ;;  %s621_s8 = scalar_lea.hbm %s946_s2, 256 }
  0x7b   : > { %p618_p13 = scmp.ne.s32.totalorder %s891_s22, %s617_s6  ;;  %p622_p12 = scmp.lt.u32.totalorder %s891_s22, %s946_s2 }
  0x7c   : > { %p623_p0 = scmp.lt.u32.totalorder %s621_s8, %s617_s6  ;;  %p625_p2 = scmp.lt.u32.totalorder %s617_s6, %s891_s22 }
  0x7d   : > { %p619_p4 = pnand %p618_p13, %p957_p8 }
  0x7e   : > { %p624_p5 = por %p623_p0, %p622_p12 }
  0x7f   : > { %p620_p6 = pneg %p619_p4 }
  0x80   : > { %p626_p9 = por %p625_p2, %p624_p5 }
  0x82   : > { %p627_p10 = pnand %p626_p9, %p620_p6 }
  0x84   : > { %630 = shalt.err (!%p627_p10)
}
  0x85   : > { %445 = dma.vmem_to_hbm [thread:$0]  (%p957_p8), %s893_s28, 128, %s891_s22, %s306_s23  }
  0x86 PF: > { %s331_s20 = sand.u32 1, %s682_s9   ;;  %p958_p11 = scmp.ne.s32.totalorder %s952_s26, 0 }
  0x87   : > { %p959_p1 = scmp.ge.s32.totalorder %s710_s16, 2  ;;  %s332_s27 = scalar_lea.sflag [#allocation4], %s331_s20 }
  0x89   : > { %p455_p3 = pnand %p959_p1, %p958_p11 }
  0x8b   : > { %676 = dma.done.wait (!%p455_p3), %s332_s27, 128  }
  0x8c   : > { %678 = vsyncadd (!%p455_p3), %s332_s27, 4294967168  ;;  %s21_s16 = sadd.s32 1, %s710_s16   ;;  %s960_s9 = smov %s686_s10 }
  0x8d   : > { %p18_p7 = scmp.ge.s32.totalorder %s21_s16, 4   ;;  %s961_s10 = smov %s690_s11 }
  0x8e   : > { %s962_s11 = smov %s790_s24  ;;  %s963_s12 = smov %s698_s13 }
  0x8f   : > { %s934_s13 = smov 0   ;;  %s964_s14 = smov %s706_s15 }
  0x90   : > { %s965_s15 = smov %s967_s19  ;;  %20 = sbr.rel (!%p18_p7) target bundleno = 9 (0x9), region = 90 }
  0x97   :  { %337 = vsyncpa [#allocation3], 1 }
  0x98   :  { %339 = vsyncpa [#allocation3 + $0x1], 1 }
  0x99   :  { %340 = vsyncpa [#allocation6], 1 }
  0x9a   :  { %342 = vsyncpa [#allocation6 + $0x1], 1 }
  0x9b   :  { %343 = vsyncpa [#allocation4], 1 }
  0x9c   :  { %345 = vsyncpa [#allocation4 + $0x1], 1 }

</bundles_post_ra>
